<compile_context>
chip_gen: v6e
topology: v6e:2x2x1
jax: 0.10.0
libtpu: 0.0.40
codegen_flags: <defaults>
</compile_context>

<pallas_src>
import jax
import jax.numpy as jnp
from jax.experimental import pallas as pl
from jax.experimental.pallas import tpu as pltpu

LEAKY_SLOPE = 0.01   # nn.LeakyReLU() default negative_slope
BN_EPS = 1e-5        # nn.BatchNorm2d default eps
LANE = 128           # lane width; N/K padded to multiples of this
VMEM_BUDGET = 12 * 1024 * 1024   # leave headroom vs. v5e's 16 MiB default scoped VMEM


def _round_up(x, m):
    return (x + m - 1) // m * m


def _pick_tm(M, Kpad, Npad):
    """M-tile for the matmul: VMEM-guarded (v5e) and megacore-friendly (v7x)."""
    def footprint(tm):
        # double-buffered A (bf16) + B (bf16) + y out (bf16); stats negligible
        return 2 * tm * Kpad * 2 + 2 * Kpad * Npad * 2 + 2 * tm * Npad * 2
    tm = 512
    while tm > 128 and footprint(tm) > VMEM_BUDGET:
        tm //= 2
    # Prefer >= 2 M-tiles so both v7x TensorCores get work on small feature maps.
    while tm > 128 and M <= tm:
        tm //= 2
    return tm


def _pick_te(Mpad):
    """Larger, independent tile for the purely elementwise epilogue kernel."""
    for t in (2048, 1024, 512, 256, 128):
        if Mpad % t == 0:
            return t
    return Mpad


# ----------------------------- Pallas kernels ------------------------------

def _conv_mm_stats_kernel(a_ref, b_ref, y_ref, sum_ref, sq_ref):
    """One M-tile of the im2col matmul + fused per-tile BN statistics.

    a_ref: (TM, Kpad) bf16   b_ref: (Kpad, Npad) bf16 (VMEM-resident across grid)
    y_ref: (TM, Npad) bf16   sum_ref / sq_ref: (1, Npad) f32 per-tile partial sums.
    """
    y = jnp.dot(a_ref[...], b_ref[...], preferred_element_type=jnp.float32)
    y_ref[...] = y.astype(y_ref.dtype)                   # bf16 store (lane-dense)
    sum_ref[...] = jnp.sum(y, axis=0, keepdims=True)     # f32 stats from f32 value
    sq_ref[...] = jnp.sum(y * y, axis=0, keepdims=True)


def _conv_matmul_stats(a, b, tm):
    """a: (Mpad, Kpad) bf16, b: (Kpad, Npad) bf16 -> (y bf16, tile sums, tile sumsq)."""
    Mpad, Kpad = a.shape
    Kpad2, Npad = b.shape
    assert Kpad == Kpad2 and Mpad % tm == 0 and Npad % LANE == 0
    grid_m = Mpad // tm
    return pl.pallas_call(
        _conv_mm_stats_kernel,
        out_shape=(
            jax.ShapeDtypeStruct((Mpad, Npad), jnp.bfloat16),
            jax.ShapeDtypeStruct((grid_m, 1, Npad), jnp.float32),
            jax.ShapeDtypeStruct((grid_m, 1, Npad), jnp.float32),
        ),
        grid_spec=pltpu.PrefetchScalarGridSpec(
            num_scalar_prefetch=0,
            grid=(grid_m,),
            in_specs=[
                pl.BlockSpec((tm, Kpad), lambda i: (i, 0)),
                pl.BlockSpec((Kpad, Npad), lambda i: (0, 0)),   # weight stays in VMEM
            ],
            out_specs=(
                pl.BlockSpec((tm, Npad), lambda i: (i, 0)),
                pl.BlockSpec((None, 1, Npad), lambda i: (i, 0, 0)),
                pl.BlockSpec((None, 1, Npad), lambda i: (i, 0, 0)),
            ),
        ),
        compiler_params=pltpu.CompilerParams(
            dimension_semantics=("parallel",)),
    )(a, b)


def _bn_leaky_kernel(y_ref, scale_ref, bias_ref, o_ref):
    # Folded BatchNorm affine + LeakyReLU, elementwise on lane-dense tiles.
    y = y_ref[...].astype(jnp.float32) * scale_ref[...] + bias_ref[...]
    o_ref[...] = jnp.where(y >= 0, y, LEAKY_SLOPE * y).astype(o_ref.dtype)


def _bn_leaky(y, scale, bias):
    """y: (Mpad, Npad) bf16, scale/bias: (Npad,) -> (Mpad, Npad) f32."""
    Mpad, Npad = y.shape
    te = _pick_te(Mpad)
    grid_m = Mpad // te
    scale2d = scale.reshape(1, Npad).astype(jnp.float32)
    bias2d = bias.reshape(1, Npad).astype(jnp.float32)
    return pl.pallas_call(
        _bn_leaky_kernel,
        out_shape=jax.ShapeDtypeStruct((Mpad, Npad), jnp.float32),
        grid_spec=pltpu.PrefetchScalarGridSpec(
            num_scalar_prefetch=0,
            grid=(grid_m,),
            in_specs=[pl.BlockSpec((te, Npad), lambda i: (i, 0)),
                      pl.BlockSpec((1, Npad), lambda i: (0, 0)),
                      pl.BlockSpec((1, Npad), lambda i: (0, 0))],
            out_specs=pl.BlockSpec((te, Npad), lambda i: (i, 0)),
        ),
        compiler_params=pltpu.CompilerParams(
            dimension_semantics=("parallel",)),
    )(y, scale2d, bias2d)


# ----------------------------- glue (plain JAX) ----------------------------

def _im2col(x_nhwc, ksize, stride, padding):
    """Patch extraction (pure data movement) -> (N*Ho*Wo, k*k*Cin), order (kh,kw,cin).

    TODO(synk): replace with a fused multi-tap conv kernel (see header) so the
    NHWC input is read ~3x instead of being rewritten 9x as a patches tensor.
    Interim mitigation: callers pass bf16 so this intermediate is half-width.
    """
    N, H, W, C = x_nhwc.shape
    xp = jnp.pad(x_nhwc, ((0, 0), (padding, padding), (padding, padding), (0, 0)))
    Ho = (H + 2 * padding - ksize) // stride + 1
    Wo = (W + 2 * padding - ksize) // stride + 1
    cols = []
    for kh in range(ksize):
        for kw in range(ksize):
            cols.append(xp[:, kh:kh + Ho * stride:stride,
                            kw:kw + Wo * stride:stride, :])
    patches = jnp.concatenate(cols, axis=-1)
    return patches.reshape(N * Ho * Wo, ksize * ksize * C), (N, Ho, Wo)


def basic_conv2d(x_nhwc, weight, gamma, beta, stride, apply_epilogue=True):
    """BasicConv: Conv2d(bias=False, pad=1) + BatchNorm2d(training stats) [+ LeakyReLU].

    apply_epilogue=True : returns the activated (N, Ho, Wo, Cout) f32 tensor
                          (BN affine + LeakyReLU done in a Pallas elementwise kernel).
    apply_epilogue=False: returns (raw conv output bf16 (N, Ho, Wo, Cout), scale, bias)
                          so the caller can fuse the affine+LeakyReLU into the next
                          consumer and avoid a standalone HBM pass.
    """
    Cout, Cin, k, _ = weight.shape
    # bf16 BEFORE patch extraction: the im2col intermediate and its pad are bf16.
    patches, (N, Ho, Wo) = _im2col(x_nhwc.astype(jnp.bfloat16), k, stride, padding=1)
    M, K = patches.shape
    Kpad = _round_up(K, LANE)
    Npad = _round_up(Cout, LANE)
    tm = _pick_tm(M, Kpad, Npad)
    Mpad = _round_up(M, tm)

    # Zero padding keeps the matmul and the BN sums exact (padded rows/cols are 0).
    a = jnp.pad(patches, ((0, Mpad - M), (0, Kpad - K)))
    # PyTorch weight (Cout, Cin, kh, kw) -> (kh, kw, Cin, Cout) -> (k*k*Cin, Cout)
    w2d = jnp.transpose(weight, (2, 3, 1, 0)).reshape(K, Cout).astype(jnp.float32)
    b = jnp.pad(w2d, ((0, Kpad - K), (0, Npad - Cout))).astype(jnp.bfloat16)

    y, tile_sums, tile_sqs = _conv_matmul_stats(a, b, tm)   # Pallas hot path (MXU)

    # Tiny (grid_m, Npad) reductions for training-mode (biased) BatchNorm statistics;
    # padded rows contribute exact zeros, so divide by the true M.
    # NOTE: single-pass f32 variance; clamped at 0 (can drift slightly vs. PyTorch
    # for very large M — acceptable for this module's feature-map sizes).
    sum_y = tile_sums[:, 0, :].sum(axis=0)
    sum_sq = tile_sqs[:, 0, :].sum(axis=0)
    mean = sum_y / M
    var = jnp.maximum(sum_sq / M - mean * mean, 0.0)

    gamma_p = jnp.pad(gamma.astype(jnp.float32), (0, Npad - Cout))
    beta_p = jnp.pad(beta.astype(jnp.float32), (0, Npad - Cout))
    scale = gamma_p * jax.lax.rsqrt(var + BN_EPS)
    bias = beta_p - mean * scale

    if apply_epilogue:
        out = _bn_leaky(y, scale, bias)                  # Pallas fused affine + LeakyReLU
        return out[:M, :Cout].reshape(N, Ho, Wo, Cout)
    # Deferred epilogue: hand back raw bf16 conv output + folded affine params.
    y4 = y[:M, :Cout].reshape(N, Ho, Wo, Cout)
    return y4, scale[:Cout], bias[:Cout]


def _nearest_resize(x_nhwc, out_h, out_w):
    """F.interpolate(mode='nearest') semantics: idx = floor(i * in / out)."""
    in_h, in_w = x_nhwc.shape[1], x_nhwc.shape[2]
    hi = (jnp.arange(out_h) * in_h) // out_h
    wi = (jnp.arange(out_w) * in_w) // out_w
    return x_nhwc[:, hi][:, :, wi]


def conv2x_forward(x_nchw, rem_nchw, params):
    """Conv2x.forward(x, rem) with concat=True, keep_concat=True. NCHW in/out."""
    x = jnp.transpose(x_nchw, (0, 2, 3, 1))     # -> NHWC (kept NHWC internally)
    rem = jnp.transpose(rem_nchw, (0, 2, 3, 1))

    # conv1 with deferred epilogue: the BN affine + LeakyReLU below is a cheap
    # elementwise expression that XLA fuses into conv2's im2col producer, so the
    # conv1->conv2 intermediate does NOT get an extra standalone HBM read+write.
    y1, s1, b1 = basic_conv2d(x, params["w1"], params["g1"], params["b1"],
                              stride=2, apply_epilogue=False)
    x1 = y1.astype(jnp.float32) * s1 + b1
    x1 = jnp.where(x1 >= 0, x1, LEAKY_SLOPE * x1).astype(jnp.bfloat16)

    if x1.shape[1:3] != rem.shape[1:3]:
        x1 = _nearest_resize(x1, rem.shape[1], rem.shape[2])

    # TODO(synk): fold this concat into conv2 by splitting w2 row-wise and
    # accumulating two matmuls in-kernel; with im2col kept, XLA fuses the concat
    # into the patch-extraction fusion, so the explicit 2*Cout tensor is bf16 only.
    xcat = jnp.concatenate([x1, rem.astype(jnp.bfloat16)], axis=-1)

    out = basic_conv2d(xcat, params["w2"], params["g2"], params["b2"],
                       stride=1, apply_epilogue=True)
    return jnp.transpose(out, (0, 3, 1, 2))     # -> NCHW


# ----------------------------- pure-JAX reference --------------------------

def _ref_basic_conv(x_nhwc, weight, gamma, beta, stride):
    w = jnp.transpose(weight, (2, 3, 1, 0)).astype(jnp.float32)
    y = jax.lax.conv_general_dilated(
        x_nhwc.astype(jnp.float32), w, window_strides=(stride, stride),
        padding=((1, 1), (1, 1)), dimension_numbers=("NHWC", "HWIO", "NHWC"),
        precision=jax.lax.Precision.HIGHEST)
    mean = jnp.mean(y, axis=(0, 1, 2))
    var = jnp.mean((y - mean) ** 2, axis=(0, 1, 2))
    yn = (y - mean) / jnp.sqrt(var + BN_EPS) * gamma + beta
    return jnp.where(yn >= 0, yn, LEAKY_SLOPE * yn)


def _ref_conv2x(x_nchw, rem_nchw, params):
    x = jnp.transpose(x_nchw, (0, 2, 3, 1))
    rem = jnp.transpose(rem_nchw, (0, 2, 3, 1))
    x = _ref_basic_conv(x, params["w1"], params["g1"], params["b1"], 2)
    if x.shape[1:3] != rem.shape[1:3]:
        x = _nearest_resize(x, rem.shape[1], rem.shape[2])
    x = jnp.concatenate([x, rem.astype(x.dtype)], axis=-1)
    x = _ref_basic_conv(x, params["w2"], params["g2"], params["b2"], 1)
    return jnp.transpose(x, (0, 3, 1, 2))


# ----------------------------------- main -----------------------------------

if __name__ == "__main__":
    key = jax.random.PRNGKey(0)
    Cin, Cout = 4, 8
    N, H, W = 2, 16, 16

    k_x, k_rem, k_w1, k_w2 = jax.random.split(key, 4)
    x = jax.random.normal(k_x, (N, Cin, H, W), jnp.float32)          # NCHW, like PyTorch
    rem = jax.random.normal(k_rem, (N, Cout, H // 2, W // 2), jnp.float32)

    params = {
        # conv1: Conv2d(Cin, Cout, 3, stride=2, pad=1, bias=False)
        "w1": 0.1 * jax.random.normal(k_w1, (Cout, Cin, 3, 3), jnp.float32),
        "g1": jnp.ones((Cout,), jnp.float32),
        "b1": jnp.zeros((Cout,), jnp.float32),
        # conv2: Conv2d(2*Cout, 2*Cout, 3, stride=1, pad=1, bias=False)
        "w2": 0.1 * jax.random.normal(k_w2, (2 * Cout, 2 * Cout, 3, 3), jnp.float32),
        "g2": jnp.ones((2 * Cout,), jnp.float32),
        "b2": jnp.zeros((2 * Cout,), jnp.float32),
    }

    out = conv2x_forward(x, rem, params)
    out = jax.block_until_ready(out)

    ref = _ref_conv2x(x, rem, params)
    assert out.shape == (N, 2 * Cout, H // 2, W // 2), out.shape
    # bf16 MXU operands + bf16-stored intermediate vs. HIGHEST-precision f32 reference:
    # tolerance matches the bf16 rounding level.
    assert jnp.allclose(out, ref, atol=1e-1, rtol=1e-1), float(jnp.max(jnp.abs(out - ref)))

    print("KERNEL_OK")
</pallas_src>

<mosaic_0001>
module attributes {stable_mosaic.version = 11 : i64} {
  func.func @_conv_mm_stats_kernel(%arg0: i32, %arg1: memref<128x128xbf16, #tpu.memory_space<vmem>>, %arg2: memref<128x128xbf16, #tpu.memory_space<vmem>>, %arg3: memref<128x128xbf16, #tpu.memory_space<vmem>>, %arg4: memref<1x1x128xf32, #tpu.memory_space<vmem>>, %arg5: memref<1x1x128xf32, #tpu.memory_space<vmem>>) attributes {dimension_semantics = [#tpu.dimension_semantics<parallel>], iteration_bounds = array<i64: 1>, scalar_prefetch = 0 : i64, scratch_operands = 0 : i64, tpu.core_type = #tpu.core_type<tc>, window_params = [{transform_indices = @transform_0, window_bounds = array<i64: 128, 128>}, {pipeline_mode = #tpu.pipeline_mode<synchronous>, transform_indices = @transform_1, window_bounds = array<i64: 128, 128>}, {transform_indices = @transform_2, window_bounds = array<i64: 128, 128>}, {transform_indices = @transform_3, window_bounds = array<i64: 1, 1, 128>}, {transform_indices = @transform_4, window_bounds = array<i64: 1, 1, 128>}]} {
    %c0 = arith.constant 0 : index
    %c0_0 = arith.constant 0 : index
    %0 = vector.load %arg1[%c0, %c0_0] : memref<128x128xbf16, #tpu.memory_space<vmem>>, vector<128x128xbf16>
    %c0_1 = arith.constant 0 : index
    %c0_2 = arith.constant 0 : index
    %1 = vector.load %arg2[%c0_1, %c0_2] : memref<128x128xbf16, #tpu.memory_space<vmem>>, vector<128x128xbf16>
    %cst = arith.constant dense<0.000000e+00> : vector<128x128xf32>
    %2 = tpu.matmul %0, %1, %cst {dimension_numbers = #tpu.dot_dimension_numbers<[1], [0], [0], [1], [0, 0, 1, 1], [], []>} : vector<128x128xbf16>, vector<128x128xbf16>, vector<128x128xf32> -> vector<128x128xf32>
    %3 = arith.truncf %2 : vector<128x128xf32> to vector<128x128xbf16>
    %c0_3 = arith.constant 0 : index
    %c0_4 = arith.constant 0 : index
    %4 = vector.load %arg3[%c0_3, %c0_4] : memref<128x128xbf16, #tpu.memory_space<vmem>>, vector<128x128xbf16>
    tpu.vector_store %arg3[%c0_3, %c0_4], %3 {strides = array<i32>} : memref<128x128xbf16, #tpu.memory_space<vmem>>, vector<128x128xbf16>,
    %cst_5 = arith.constant dense<0.000000e+00> : vector<128xf32>
    %5 = vector.multi_reduction <add>, %2, %cst_5 [0] : vector<128x128xf32> to vector<128xf32>
    %6 = vector.shape_cast %5 : vector<128xf32> to vector<1x128xf32>
    %c0_6 = arith.constant 0 : index
    %c0_7 = arith.constant 0 : index
    %c0_8 = arith.constant 0 : index
    %7 = vector.load %arg4[%c0_6, %c0_7, %c0_8] : memref<1x1x128xf32, #tpu.memory_space<vmem>>, vector<1x1x128xf32>
    %8 = vector.shape_cast %7 : vector<1x1x128xf32> to vector<1x128xf32>
    %9 = vector.shape_cast %6 : vector<1x128xf32> to vector<1x1x128xf32>
    tpu.vector_store %arg4[%c0_6, %c0_7, %c0_8], %9 {strides = array<i32>} : memref<1x1x128xf32, #tpu.memory_space<vmem>>, vector<1x1x128xf32>,
    %10 = arith.mulf %2, %2 : vector<128x128xf32>
    %cst_9 = arith.constant dense<0.000000e+00> : vector<128xf32>
    %11 = vector.multi_reduction <add>, %10, %cst_9 [0] : vector<128x128xf32> to vector<128xf32>
    %12 = vector.shape_cast %11 : vector<128xf32> to vector<1x128xf32>
    %c0_10 = arith.constant 0 : index
    %c0_11 = arith.constant 0 : index
    %c0_12 = arith.constant 0 : index
    %13 = vector.load %arg5[%c0_10, %c0_11, %c0_12] : memref<1x1x128xf32, #tpu.memory_space<vmem>>, vector<1x1x128xf32>
    %14 = vector.shape_cast %13 : vector<1x1x128xf32> to vector<1x128xf32>
    %15 = vector.shape_cast %12 : vector<1x128xf32> to vector<1x1x128xf32>
    tpu.vector_store %arg5[%c0_10, %c0_11, %c0_12], %15 {strides = array<i32>} : memref<1x1x128xf32, #tpu.memory_space<vmem>>, vector<1x1x128xf32>,
    return
  }
  func.func @transform_0(%arg0: i32) -> (i32, i32) {
    %c0_i32 = arith.constant 0 : i32
    %c0_i32_0 = arith.constant 0 : i32
    return %arg0, %c0_i32 : i32, i32
  }
  func.func @transform_1(%arg0: i32) -> (i32, i32) {
    %c0_i32 = arith.constant 0 : i32
    %c0_i32_0 = arith.constant 0 : i32
    %c0_i32_1 = arith.constant 0 : i32
    return %c0_i32, %c0_i32_0 : i32, i32
  }
  func.func @transform_2(%arg0: i32) -> (i32, i32) {
    %c0_i32 = arith.constant 0 : i32
    %c0_i32_0 = arith.constant 0 : i32
    return %arg0, %c0_i32 : i32, i32
  }
  func.func @transform_3(%arg0: i32) -> (i32, i32, i32) {
    %c0_i32 = arith.constant 0 : i32
    %c0_i32_0 = arith.constant 0 : i32
    %c0_i32_1 = arith.constant 0 : i32
    return %arg0, %c0_i32, %c0_i32_0 : i32, i32, i32
  }
  func.func @transform_4(%arg0: i32) -> (i32, i32, i32) {
    %c0_i32 = arith.constant 0 : i32
    %c0_i32_0 = arith.constant 0 : i32
    %c0_i32_1 = arith.constant 0 : i32
    return %arg0, %c0_i32, %c0_i32_0 : i32, i32, i32
  }
}

</mosaic_0001>

<bundles_post_ra>
// kernel: tpu_custom_call.1
= control target key start
LH: loop header
LB: loop body
LE: loop exit
PB: predicated region body
PF: predicated region fallthrough
CT: control target
= control target key end

     0   :  { %10 = vsyncpa [#allocation3], 0  ;;  %s825_s0 = inlined_call_operand.hbm [shape: bf16[128,128], index: 0, kind: input, shape index: {}]   ;;  %s826_s1 = inlined_call_operand.hbm [shape: bf16[128,128], index: 1, kind: input, shape index: {}]   ;;  %s827_s2 = inlined_call_operand.hbm [shape: bf16[128,128], index: 2, kind: output, shape index: {0}]   ;;  %s828_s3 = inlined_call_operand.hbm [shape: f32[1,1,128], index: 3, kind: output, shape index: {1}]   ;;  %s829_s4 = inlined_call_operand.hbm [shape: f32[1,1,128], index: 4, kind: output, shape index: {2}]  }
   0x1   :  { %11 = vsyncpa [#allocation6], 0 }
   0x2   :  { %12 = vsyncpa [#allocation4], 0 }
   0x3   :  { %13 = vsyncpa [#allocation9], 0  ;;  %s745_s15 = smov [#allocation2]  }
   0x4   :  { %s19_s16 = sshll.u32 %s745_s15, 4  ;;  %s20_s16 = int_to_ptr.vmem [resolvable:$true] %s19_s16 }
   0x5   :  { %s645_s17 = scalar_lea.vmem %s20_s16, 1024  ;;  %p650_p1 = scmp.lt.s32.totalorder %s20_s16, %s20_s16 }
   0x6   :  { %p646_p0 = scmp.ne.s32.totalorder %s20_s16, %s645_s17  ;;  %p651_p2 = scmp.lt.s32.totalorder %s645_s17, %s645_s17 }
   0x8   :  { %p652_p3 = por %p651_p2, %p650_p1 }
   0xa   :  { %p653_p4 = pnand %p652_p3, %p646_p0 }
   0xc   :  { %656 = shalt.err (!%p653_p4)
}
   0xd   :  { %s746_s18 = smov 64   ;;  %s747_s19 = smov 4  }
   0xe   :  { %25 = dma.hbm_to_vmem [thread:$0]  %s825_s0, 1024, %s20_s16, [#allocation3], %s746_s18, %s746_s18, %s747_s19  }
   0xf   :  { %s748_s22 = smov [#allocation5]  }
  0x10   :  { %s31_s23 = sshll.u32 %s748_s22, 4  ;;  %s32_s23 = int_to_ptr.vmem [resolvable:$true] %s31_s23 }
  0x11   :  { %s665_s24 = scalar_lea.vmem %s32_s23, 1024  ;;  %p670_p6 = scmp.lt.s32.totalorder %s32_s23, %s32_s23 }
  0x12   :  { %p666_p5 = scmp.ne.s32.totalorder %s32_s23, %s665_s24  ;;  %p671_p7 = scmp.lt.s32.totalorder %s665_s24, %s665_s24 }
  0x14   :  { %p672_p8 = por %p671_p7, %p670_p6 }
  0x16   :  { %p673_p9 = pnand %p672_p8, %p666_p5 }
  0x18   :  { %676 = shalt.err (!%p673_p9)
}
  0x19   :  { %37 = dma.hbm_to_vmem [thread:$0]  %s826_s1, 1024, %s32_s23, [#allocation6], %s746_s18, %s746_s18, %s747_s19  }
  0x1a   :  { %737 = dma.done.wait [#allocation3], 1024  }
  0x1b   :  { %738 = vsyncadd [#allocation3], 4294966272 }
  0x1c   :  { %739 = dma.done.wait [#allocation6], 1024  }
  0x1d   :  { %740 = vsyncadd [#allocation6], 4294966272  ;;  %v621_v0 = vld [vmem:[#allocation5 + $0x38] sm:$0xff]   ;;  %v622_v1 = vld [vmem:[#allocation5 + $0x30] sm:$0xff]   ;;  %s749_s0 = smov [#allocation7]  }
  0x1e   :  { %566 = vmatprep.subr.bf16.mxu0 %v621_v0  ;;  %598 = vmatprep.subr.bf16.mxu1 %v621_v0  ;;  %v623_v2 = vld [vmem:[#allocation5 + $0x28] sm:$0xff]   ;;  %v624_v3 = vld [vmem:[#allocation5 + $0x20] sm:$0xff]   ;;  %v625_v5 = vld [vmem:[#allocation5 + $0x18] sm:$0xff]   ;;  %s415_s1 = sshll.u32 %s749_s0, 4  ;;  %s416_s1 = int_to_ptr.vmem [resolvable:$true] %s415_s1 }
  0x1f   :  { %567 = vmatpush3.bf16.msra.mxu0 %v621_v0  ;;  %606 = vmatpush3.bf16.msra.mxu1 %v621_v0  ;;  %v629_v4 = vld [vmem:[#allocation2] sm:$0xff]   ;;  %v626_v7 = vld [vmem:[#allocation5 + $0x10] sm:$0xff]   ;;  %v627_v8 = vld [vmem:[#allocation5 + $0x8] sm:$0xff]   ;;  %s677_s27 = scalar_lea.vmem %s416_s1, 1024  ;;  %p682_p11 = scmp.lt.s32.totalorder %s416_s1, %s416_s1 }
  0x20   :  { %568 = vmatprep.subr.bf16.mxu0 %v622_v1  ;;  %599 = vmatprep.subr.bf16.mxu1 %v622_v1  ;;  %v633_v6 = vld [vmem:[#allocation2 + $0x20] sm:$0xff]   ;;  %v630_v10 = vld [vmem:[#allocation2 + $0x8] sm:$0xff]   ;;  %v631_v12 = vld [vmem:[#allocation2 + $0x10] sm:$0xff]   ;;  %p678_p10 = scmp.ne.s32.totalorder %s416_s1, %s677_s27  ;;  %p683_p12 = scmp.lt.s32.totalorder %s677_s27, %s677_s27 }
  0x21   :  { %582 = vmatprep.mubr.bf16.mxu0 %v629_v4  ;;  %590 = vmatprep.mubr.bf16.mxu1 %v633_v6  ;;  %v628_v9 = vld [vmem:[#allocation5] sm:$0xff]   ;;  %v634_v11 = vld [vmem:[#allocation2 + $0x28] sm:$0xff]   ;;  %v635_v13 = vld [vmem:[#allocation2 + $0x30] sm:$0xff]  }
  0x22   :  { %v632_v14 = vld [vmem:[#allocation2 + $0x18] sm:$0xff]   ;;  %p684_p13 = por %p683_p12, %p682_p11 }
  0x23   :  { %569 = vmatpush3.bf16.msra.mxu0 %v622_v1  ;;  %607 = vmatpush3.bf16.msra.mxu1 %v622_v1  ;;  %v636_v15 = vld [vmem:[#allocation2 + $0x38] sm:$0xff]  }
  0x24   :  { %570 = vmatprep.subr.bf16.mxu0 %v623_v2  ;;  %600 = vmatprep.subr.bf16.mxu1 %v623_v2  ;;  %p685_p0 = pnand %p684_p13, %p678_p10 }
  0x27   :  { %571 = vmatpush3.bf16.msra.mxu0 %v623_v2  ;;  %608 = vmatpush3.bf16.msra.mxu1 %v623_v2 }
  0x28   :  { %572 = vmatprep.subr.bf16.mxu0 %v624_v3  ;;  %601 = vmatprep.subr.bf16.mxu1 %v624_v3 }
  0x2b   :  { %573 = vmatpush3.bf16.msra.mxu0 %v624_v3  ;;  %609 = vmatpush3.bf16.msra.mxu1 %v624_v3 }
  0x2c   :  { %574 = vmatprep.subr.bf16.mxu0 %v625_v5  ;;  %602 = vmatprep.subr.bf16.mxu1 %v625_v5 }
  0x2f   :  { %575 = vmatpush3.bf16.msra.mxu0 %v625_v5  ;;  %610 = vmatpush3.bf16.msra.mxu1 %v625_v5 }
  0x30   :  { %576 = vmatprep.subr.bf16.mxu0 %v626_v7  ;;  %603 = vmatprep.subr.bf16.mxu1 %v626_v7 }
  0x33   :  { %577 = vmatpush3.bf16.msra.mxu0 %v626_v7  ;;  %611 = vmatpush3.bf16.msra.mxu1 %v626_v7 }
  0x34   :  { %578 = vmatprep.subr.bf16.mxu0 %v627_v8  ;;  %604 = vmatprep.subr.bf16.mxu1 %v627_v8 }
  0x37   :  { %579 = vmatpush3.bf16.msra.mxu0 %v627_v8  ;;  %612 = vmatpush3.bf16.msra.mxu1 %v627_v8 }
  0x38   :  { %580 = vmatprep.subr.bf16.mxu0 %v628_v9  ;;  %605 = vmatprep.subr.bf16.mxu1 %v628_v9 }
  0x3b   :  { %581 = vmatpush3.bf16.msra.mxu0 %v628_v9  ;;  %613 = vmatpush3.bf16.msra.mxu1 %v628_v9 }
  0x3e   :  { %583 = vmatmul.mubr.bf16.vlgmr.msra.gmra.mxu0 %v630_v10  ;;  %591 = vmatmul.mubr.bf16.vlgmr.msra.gmra.mxu1 %v634_v11 }
  0x3f   :  { %586 = vmatprep.mubr.bf16.mxu0 %v631_v12  ;;  %594 = vmatprep.mubr.bf16.mxu1 %v635_v13 }
  0x46   :  { %587 = vmatmul.mubr.bf16.gmra.mxu0 %v632_v14  ;;  %595 = vmatmul.mubr.bf16.gmra.mxu1 %v636_v15 }
  0xfe   :  { %v584_v16 = vpop.f32.mrf.mxu0  ;;  %v789_v17 = vpop.f32.mrf.mxu1 }
  0xff   :  { %v374_v33 = vmul.f32 %v584_v16, %v584_v16 }
 0x100   :  { %v207_v18 = vpop.f32.mrf.mxu0  ;;  %v791_v19 = vpop.f32.mrf.mxu1 }
 0x101   :  { %v372_v24 = vmul.f32 %v207_v18, %v207_v18 }
 0x102   :  { %v585_v20 = vpop.f32.mrf.mxu0  ;;  %v793_v21 = vpop.f32.mrf.mxu1 }
 0x103   :  { %v511_v22 = vpack.c.bf16 %v585_v20, %v584_v16  ;;  %v531_v23 = vpack.c.bf16 %v793_v21, %v789_v17  ;;  %v375_v38 = vmul.f32 %v585_v20, %v585_v20 }
 0x104   :  { %v210_v25 = vpop.f32.mrf.mxu0  ;;  %v242_v26 = vpop.f32.mrf.mxu1 }
 0x105   :  { %543 = vst [vmem:[#allocation7 + $0x8] sm:$0xff] %v511_v22   ;;  %v506_v27 = vpack.c.bf16 %v210_v25, %v207_v18  ;;  %v350_v28 = vadd.f32 %v210_v25, %v207_v18  ;;  %v373_v29 = vmul.f32 %v210_v25, %v210_v25  ;;  %547 = vst [vmem:[#allocation7 + $0x28] sm:$0xff] %v531_v23  }
 0x106   :  { %v526_v30 = vpack.c.bf16 %v242_v26, %v791_v19  ;;  %v588_v31 = vpop.f32.mrf.mxu0  ;;  %v798_v32 = vpop.f32.mrf.mxu1 }
 0x107   :  { %507 = vst [vmem:[#allocation7] sm:$0xff] %v506_v27   ;;  %v351_v34 = vadd.f32 %v584_v16, %v350_v28  ;;  %v388_v35 = vadd.f32 %v373_v29, %v372_v24  ;;  %v378_v55 = vmul.f32 %v588_v31, %v588_v31 }
 0x108   :  { %546 = vst [vmem:[#allocation7 + $0x20] sm:$0xff] %v526_v30   ;;  %v223_v36 = vpop.f32.mrf.mxu0  ;;  %v255_v37 = vpop.f32.mrf.mxu1 }
 0x109   :  { %v389_v39 = vadd.f32 %v388_v35, %v374_v33  ;;  %v352_v40 = vadd.f32 %v585_v20, %v351_v34  ;;  %v376_v44 = vmul.f32 %v223_v36, %v223_v36 }
 0x10a   :  { %v589_v41 = vpop.f32.mrf.mxu0  ;;  %v597_v42 = vpop.f32.mrf.mxu1 }
 0x10b   :  { %v353_v43 = vadd.f32 %v352_v40, %v223_v36  ;;  %v390_v45 = vadd.f32 %v389_v39, %v375_v38  ;;  %v521_v46 = vpack.c.bf16 %v589_v41, %v588_v31  ;;  %v541_v48 = vpack.c.bf16 %v597_v42, %v798_v32 }
 0x10c   :  { %v226_v47 = vpop.f32.mrf.mxu0  ;;  %v258_v49 = vpop.f32.mrf.mxu1  ;;  %v379_v58 = vmul.f32 %v589_v41, %v589_v41 }
 0x10d   :  { %v391_v50 = vadd.f32 %v390_v45, %v376_v44  ;;  %545 = vst [vmem:[#allocation7 + $0x18] sm:$0xff] %v521_v46   ;;  %v516_v51 = vpack.c.bf16 %v226_v47, %v223_v36  ;;  %v354_v52 = vadd.f32 %v353_v43, %v226_v47  ;;  %v377_v53 = vmul.f32 %v226_v47, %v226_v47 }
 0x10e   :  { %549 = vst [vmem:[#allocation7 + $0x38] sm:$0xff] %v541_v48   ;;  %v536_v54 = vpack.c.bf16 %v258_v49, %v255_v37 }
 0x10f   :  { %544 = vst [vmem:[#allocation7 + $0x10] sm:$0xff] %v516_v51   ;;  %v355_v56 = vadd.f32 %v588_v31, %v354_v52  ;;  %v392_v57 = vadd.f32 %v391_v50, %v377_v53 }
 0x110   :  { %548 = vst [vmem:[#allocation7 + $0x30] sm:$0xff] %v536_v54  }
 0x111   :  { %v356_v59 = vadd.f32 %v589_v41, %v355_v56  ;;  %v393_v60 = vadd.f32 %v392_v57, %v378_v55 }
 0x112   :  { %688 = shalt.err (!%p685_p0)
}
 0x113   :  { %421 = dma.vmem_to_hbm [thread:$0]  %s416_s1, 1024, %s827_s2, [#allocation4], %s746_s18, %s746_s18, %s747_s19   ;;  %v380_v61 = vmul.f32 %v791_v19, %v791_v19  ;;  %v394_v62 = vadd.f32 %v393_v60, %v379_v58  ;;  %v357_v63 = vadd.f32 %v356_v59, %v791_v19  ;;  %v381_v1 = vmul.f32 %v242_v26, %v242_v26 }
 0x114   :  { %v382_v3 = vmul.f32 %v789_v17, %v789_v17  ;;  %v383_v6 = vmul.f32 %v793_v21, %v793_v21  ;;  %v384_v10 = vmul.f32 %v255_v37, %v255_v37  ;;  %v385_v14 = vmul.f32 %v258_v49, %v258_v49  ;;  %s750_s2 = smov [#allocation8]   ;;  %s751_s5 = smov [#allocation10]  }
 0x115   :  { %v358_v0 = vadd.f32 %v357_v63, %v242_v26  ;;  %v395_v2 = vadd.f32 %v394_v62, %v380_v61  ;;  %v386_v15 = vmul.f32 %v798_v32, %v798_v32  ;;  %s428_s30 = sshll.u32 %s750_s2, 4  ;;  %s438_s6 = sshll.u32 %s751_s5, 4  ;;  %s429_s30 = int_to_ptr.vmem [resolvable:$true] %s428_s30  ;;  %s439_s6 = int_to_ptr.vmem [resolvable:$true] %s438_s6 }
 0x116   :  { %s697_s7 = scalar_lea.vmem %s429_s30, 16  ;;  %s701_s8 = scalar_lea.vmem %s429_s30, 32 }
 0x117   :  { %v359_v4 = vadd.f32 %v789_v17, %v358_v0  ;;  %v396_v5 = vadd.f32 %v395_v2, %v381_v1  ;;  %v387_v17 = vmul.f32 %v597_v42, %v597_v42  ;;  %p698_p1 = scmp.ne.s32.totalorder %s429_s30, %s697_s7  ;;  %p702_p2 = scmp.lt.s32.totalorder %s429_s30, %s429_s30 }
 0x118   :  { %p703_p3 = scmp.lt.s32.totalorder %s701_s8, %s697_s7 }
 0x119   :  { %v397_v7 = vadd.f32 %v396_v5, %v382_v3  ;;  %v360_v8 = vadd.f32 %v793_v21, %v359_v4 }
 0x11a   :  { %p704_p4 = por %p703_p3, %p702_p2 }
 0x11b   :  { %v361_v9 = vadd.f32 %v360_v8, %v255_v37  ;;  %v398_v11 = vadd.f32 %v397_v7, %v383_v6 }
 0x11c   :  { %p705_p5 = pnand %p704_p4, %p698_p1 }
 0x11d   :  { %v399_v12 = vadd.f32 %v398_v11, %v384_v10  ;;  %v362_v13 = vadd.f32 %v361_v9, %v258_v49 }
 0x11f   :  { %v363_v16 = vadd.f32 %v798_v32, %v362_v13  ;;  %v400_v18 = vadd.f32 %v399_v12, %v385_v14 }
 0x121   :  { %v364_v19 = vadd.f32 %v597_v42, %v363_v16  ;;  %v401_v20 = vadd.f32 %v400_v18, %v386_v15 }
 0x123   :  { %v365_v22 = vrot.slane %v364_v19, 4  ;;  %v402_v23 = vadd.f32 %v401_v20, %v387_v17 }
 0x125   :  { %v403_v24 = vrot.slane %v402_v23, 4  ;;  %v366_v25 = vadd.f32 %v365_v22, %v364_v19 }
 0x127   :  { %v367_v21 = vrot.slane %v366_v25, 2  ;;  %v404_v26 = vadd.f32 %v403_v24, %v402_v23 }
 0x129   :  { %v368_v27 = vadd.f32 %v367_v21, %v366_v25  ;;  %v405_v28 = vrot.slane %v404_v26, 2 }
 0x12b   :  { %v369_v29 = vrot.slane %v368_v27, 1  ;;  %v406_v30 = vadd.f32 %v405_v28, %v404_v26 }
 0x12d   :  { %v370_v31 = vadd.f32 %v369_v29, %v368_v27  ;;  %v407_v32 = vrot.slane %v406_v30, 1 }
 0x12f   :  { %371 = vst [vmem:[#allocation8] sm:$0x1] %v370_v31  ;;  %v408_v33 = vadd.f32 %v407_v32, %v406_v30 }
 0x130   :  { %708 = shalt.err (!%p705_p5)
}
 0x131   :  { %431 = dma.vmem_to_hbm [thread:$0]  %s429_s30, 16, %s828_s3, [#allocation9]   ;;  %409 = vst [vmem:[#allocation10] sm:$0x1] %v408_v33 }
 0x132   :  { %s717_s11 = scalar_lea.vmem %s439_s6, 16  ;;  %s721_s12 = scalar_lea.vmem %s439_s6, 32 }
 0x133   :  { %p718_p6 = scmp.ne.s32.totalorder %s439_s6, %s717_s11  ;;  %p722_p7 = scmp.lt.s32.totalorder %s439_s6, %s439_s6 }
 0x134   :  { %p723_p8 = scmp.lt.s32.totalorder %s721_s12, %s717_s11 }
 0x136   :  { %p724_p9 = por %p723_p8, %p722_p7 }
 0x138   :  { %p725_p10 = pnand %p724_p9, %p718_p6 }
 0x13a   :  { %728 = shalt.err (!%p725_p10)
}
 0x13b   :  { %441 = dma.vmem_to_hbm [thread:$0]  %s439_s6, 16, %s829_s4, [#allocation9]  }
 0x13c   :  { %741 = dma.done.wait [#allocation4], 1024  }
 0x13d   :  { %742 = vsyncadd [#allocation4], 4294966272 }
 0x13e   :  { %743 = dma.done.wait [#allocation9], 32  }
 0x13f   :  { %744 = vsyncadd [#allocation9], 4294967264 }
 0x140   :  { %451 = vsyncpa [#allocation3], 1 }
 0x141   :  { %452 = vsyncpa [#allocation6], 1 }
 0x142   :  { %453 = vsyncpa [#allocation4], 1 }
 0x143   :  { %454 = vsyncpa [#allocation9], 1 }

</bundles_post_ra>
